<compile_context>
chip_gen: v7x
topology: tpu7x:2x2x1
jax: 0.10.0
libtpu: 0.0.40
codegen_flags: <defaults>
</compile_context>

<pallas_src>
import jax
import jax.numpy as jnp
from jax.experimental import pallas as pl
from jax.experimental.pallas import tpu as pltpu


_VMEM_LIMIT = 32 * 1024 * 1024


def _round_up(x, m):
    return ((x + m - 1) // m) * m


def _identity_kernel(x_ref, o_ref):
    # Pure copy of the current (tr, C) tile.
    o_ref[...] = x_ref[...]


def identity(x):
    """Pallas-backed Identity: returns an array equal to x (same shape/dtype)."""
    orig_shape = x.shape
    orig_dtype = x.dtype
    flat = x.reshape(-1)
    n = flat.shape[0]

    # Lane-dense layout: wide last dim (multiple of 128) for unmasked stores.
    lane = 1024 if n >= 8 * 1024 else 128
    rows = _round_up(pl.cdiv(n, lane), 8)
    # Row tile: up to 512 rows -> <= 2 MiB per f32 buffer; double-buffered
    # in/out stays far below the scoped VMEM limit on v5e/v6e/v7x.
    tr = min(512, rows)
    rows = _round_up(rows, tr)
    padded = rows * lane

    flat_p = jnp.pad(flat, (0, padded - n))
    x2d = flat_p.reshape(rows, lane)

    out2d = pl.pallas_call(
        _identity_kernel,
        out_shape=jax.ShapeDtypeStruct((rows, lane), orig_dtype),
        grid_spec=pltpu.PrefetchScalarGridSpec(
            num_scalar_prefetch=0,
            grid=(rows // tr,),
            in_specs=[pl.BlockSpec((tr, lane), lambda i: (i, 0))],
            out_specs=pl.BlockSpec((tr, lane), lambda i: (i, 0)),
        ),
        compiler_params=pltpu.CompilerParams(
            dimension_semantics=("parallel",),
            vmem_limit_bytes=_VMEM_LIMIT,
        ),
    )(x2d)

    return out2d.reshape(padded)[:n].reshape(orig_shape).astype(orig_dtype)


identity_jit = jax.jit(identity)


if __name__ == "__main__":
    key = jax.random.PRNGKey(0)
    # Small shapes consistent with the surrounding model: NCHW, batch=2,
    # 4 channels, 16x16 spatial.
    x = jax.random.normal(key, (2, 4, 16, 16), jnp.float32)
    out = identity_jit(x)
    out = jax.block_until_ready(out)
    assert out.shape == x.shape, out.shape
    assert out.dtype == x.dtype, out.dtype
    assert bool(jnp.array_equal(out, x))
    print("KERNEL_OK")
</pallas_src>

<mosaic_0001>
module attributes {stable_mosaic.version = 11 : i64} {
  func.func @_identity_kernel(%arg0: i32, %arg1: memref<16x128xf32, #tpu.memory_space<vmem>>, %arg2: memref<16x128xf32, #tpu.memory_space<vmem>>) attributes {dimension_semantics = [#tpu.dimension_semantics<parallel>], iteration_bounds = array<i64: 1>, scalar_prefetch = 0 : i64, scratch_operands = 0 : i64, tpu.core_type = #tpu.core_type<tc>, window_params = [{transform_indices = @transform_0, window_bounds = array<i64: 16, 128>}, {transform_indices = @transform_1, window_bounds = array<i64: 16, 128>}]} {
    %c0 = arith.constant 0 : index
    %c0_0 = arith.constant 0 : index
    %0 = vector.load %arg1[%c0, %c0_0] : memref<16x128xf32, #tpu.memory_space<vmem>>, vector<16x128xf32>
    %c0_1 = arith.constant 0 : index
    %c0_2 = arith.constant 0 : index
    %1 = vector.load %arg2[%c0_1, %c0_2] : memref<16x128xf32, #tpu.memory_space<vmem>>, vector<16x128xf32>
    tpu.vector_store %arg2[%c0_1, %c0_2], %0 {strides = array<i32>} : memref<16x128xf32, #tpu.memory_space<vmem>>, vector<16x128xf32>,
    return
  }
  func.func @transform_0(%arg0: i32) -> (i32, i32) {
    %c0_i32 = arith.constant 0 : i32
    %c0_i32_0 = arith.constant 0 : i32
    return %arg0, %c0_i32 : i32, i32
  }
  func.func @transform_1(%arg0: i32) -> (i32, i32) {
    %c0_i32 = arith.constant 0 : i32
    %c0_i32_0 = arith.constant 0 : i32
    return %arg0, %c0_i32 : i32, i32
  }
}

</mosaic_0001>

<bundles_post_ra>
// kernel: identity.1
= control target key start
LH: loop header
LB: loop body
LE: loop exit
PB: predicated region body
PF: predicated region fallthrough
CT: control target
= control target key end

     0   :  { %s38_s0 = inlined_call_operand.vmem [shape: f32[16,128], index: 0, kind: input, shape index: {}]   ;;  %s39_s1 = inlined_call_operand.vmem [shape: f32[16,128], index: 1, kind: output, shape index: {}]  }
   0x1   :  { %v8_v0 = vld [vmem:[%s38_s0] sm:$0xff]  ;;  %v9_v1 = vld [vmem:[%s38_s0 + $0x8] sm:$0xff] }
   0x2   :  { %10 = vst [vmem:[%s39_s1] sm:$0xff] %v8_v0  ;;  %11 = vst [vmem:[%s39_s1 + $0x8] sm:$0xff] %v9_v1 }

</bundles_post_ra>
